<compile_context>
chip_gen: v6e
topology: v6e:2x2x1
jax: 0.10.0
libtpu: 0.0.40
codegen_flags: <defaults>
</compile_context>

<pallas_src>
import jax
import jax.numpy as jnp
from jax.experimental import pallas as pl
from jax.experimental.pallas import tpu as pltpu

# ---------------- problem sizes (small, synthetic) ----------------
BATCH = 8
NUM_COVARIATES = 32
NUM_HIDDEN_Z = 32
NUM_CONCEPTS = 16
NUM_HIDDEN_Y = 32
NUM_CLASSES = 4          # > 2  ->  softmax head

PAD = 128                                    # lane width for the hidden/output dims
LOGIT_LO = NUM_CONCEPTS                      # packed slab layout:
LOGIT_HI = NUM_CONCEPTS + NUM_CLASSES        #   [0:16)  concepts c
PROB_LO = LOGIT_HI                           #   [16:20) logits
PROB_HI = PROB_LO + NUM_CLASSES              #   [20:24) probs
assert PROB_HI <= PAD


def _round_up(n, m):
    return ((n + m - 1) // m) * m


def _num_tensorcores():
    """Best-effort TensorCore count (2 on v7x / megacore, else 1)."""
    try:
        n = getattr(jax.local_devices()[0], "num_cores", 1)
        return max(1, int(n)) if n else 1
    except Exception:
        return 1


# ---------------------------------------------------------------------------
# Kernel
# ---------------------------------------------------------------------------
def pcbm_kernel(x_ref, w_enc_ref, w_ref, b_ref, out_ref):
    """One batch tile of the fused pCBM forward.

    x_ref:     (tb, 32)        raw covariates (no lane padding)
    w_enc_ref: (32, 128)       W_enc, output dim zero-padded to 128 lanes
    w_ref:     (3, 128, 128)   [W_probe, W1, W2] zero-padded, (in, out);
                               W2's valid cols duplicated at lanes 16..19 & 20..23
    b_ref:     (8, 128)        rows 0..3 = [b_enc, b_probe, b1, b2];
                               b_probe's padded lanes are -1e30 (sigmoid -> 0)
    out_ref:   (tb, 128)       packed [ c | logits | probs | 0 ]
    """
    x = x_ref[...]
    biases = b_ref[...]
    b_enc, b_probe, b1, b2 = biases[0:1], biases[1:2], biases[2:3], biases[3:4]

    # encoder (backbone) + relu : (tb,32) @ (32,128)
    z = jnp.maximum(
        jnp.dot(x, w_enc_ref[...], preferred_element_type=jnp.float32) + b_enc, 0.0)

    # probe + sigmoid -> concepts; padded lanes have bias -1e30 so c == 0 there
    c = jax.nn.sigmoid(
        jnp.dot(z, w_ref[0], preferred_element_type=jnp.float32) + b_probe)

    # head fc1 + relu (W1 rows >= 16 are zero)
    h = jnp.maximum(
        jnp.dot(c, w_ref[1], preferred_element_type=jnp.float32) + b1, 0.0)

    # head fc2: logits appear at lanes [16:20) and (duplicated) at [20:24);
    # all other lanes of y are exactly 0 (zero weight cols + zero bias).
    y = jnp.dot(h, w_ref[2], preferred_element_type=jnp.float32) + b2

    lane = jax.lax.broadcasted_iota(jnp.int32, (1, PAD), 1)
    prob_mask = (lane >= PROB_LO) & (lane < PROB_HI)          # (1, 128)

    # numerically-stable softmax over the probs lanes only
    masked = jnp.where(prob_mask, y, -1e30)
    m = jnp.max(masked, axis=-1, keepdims=True)
    e = jnp.exp(masked - m)                                   # underflows to 0 off-mask
    denom = jnp.sum(e, axis=-1, keepdims=True)
    probs = e * pl.reciprocal(denom, approx=False)            # exact; denom is (tb,1)

    # c is 0 outside [0:16), y is 0 outside [16:24)  ->  one select packs everything
    out_ref[...] = (c + jnp.where(prob_mask, probs, y)).astype(out_ref.dtype)


# ---------------------------------------------------------------------------
# One-time parameter packing (hoisted out of the forward)
# ---------------------------------------------------------------------------
def prepare_params(params):
    """Pack/pad parameters into kernel layout. Call ONCE; reuse across forwards."""
    (w_enc, b_enc, w_probe, b_probe, w1, b1, w2, b2) = params

    # W_enc stays at its real K (=num_covariates); only the output dim is padded.
    w_enc_p = (jnp.zeros((NUM_COVARIATES, PAD), jnp.float32)
               .at[:, :NUM_HIDDEN_Z].set(w_enc))

    def pad_w(w):
        return jnp.zeros((PAD, PAD), jnp.float32).at[:w.shape[0], :w.shape[1]].set(w)

    # W2: duplicate the 4 valid output columns at the logits slot and the probs
    # slot of the packed output so no lane shuffling is needed in-kernel.
    w2_p = jnp.zeros((PAD, PAD), jnp.float32)
    w2_p = w2_p.at[:NUM_HIDDEN_Y, LOGIT_LO:LOGIT_HI].set(w2)
    w2_p = w2_p.at[:NUM_HIDDEN_Y, PROB_LO:PROB_HI].set(w2)

    w_stack = jnp.stack([pad_w(w_probe), pad_w(w1), w2_p])    # (3, 128, 128)

    b_stack = jnp.zeros((8, PAD), jnp.float32)
    b_stack = b_stack.at[0, :NUM_HIDDEN_Z].set(b_enc.reshape(-1))
    # probe bias: padded lanes get a huge negative so sigmoid -> exactly 0 there
    b_stack = b_stack.at[1].set(jnp.full((PAD,), -1e30, jnp.float32))
    b_stack = b_stack.at[1, :NUM_CONCEPTS].set(b_probe.reshape(-1))
    b_stack = b_stack.at[2, :NUM_HIDDEN_Y].set(b1.reshape(-1))
    b_stack = b_stack.at[3, LOGIT_LO:LOGIT_HI].set(b2.reshape(-1))
    b_stack = b_stack.at[3, PROB_LO:PROB_HI].set(b2.reshape(-1))

    return (w_enc_p, w_stack, b_stack)


# ---------------------------------------------------------------------------
# Forward
# ---------------------------------------------------------------------------
def pcbm_forward(x, packed_params, *, block_b=1024):
    """Fused pCBM forward. x: (B, NUM_COVARIATES) float32, packed_params from
    prepare_params(). Returns (c, y_pred_probs, y_pred_logits)."""
    w_enc_p, w_stack, b_stack = packed_params
    B = x.shape[0]

    # Batch tile: big for single-TC chips (fewer ~0.35us grid steps); balanced
    # across cores when the device has >1 TensorCore (v7x / megacore).
    tb = min(_round_up(block_b, 8), _round_up(B, 8))
    num_cores = _num_tensorcores()
    if num_cores > 1 and B > 8 * num_cores:
        tb = min(tb, _round_up(pl.cdiv(B, num_cores), 8))
    nb = pl.cdiv(B, tb)                   # ragged last block is fine: ops are row-wise

    packed = pl.pallas_call(
        pcbm_kernel,
        out_shape=jax.ShapeDtypeStruct((B, PAD), jnp.float32),
        grid=(nb,),
        in_specs=[
            pl.BlockSpec((tb, NUM_COVARIATES), lambda i: (i, 0)),   # x tile, unpadded K
            pl.BlockSpec((NUM_COVARIATES, PAD), lambda i: (0, 0)),  # W_enc: VMEM-resident
            pl.BlockSpec((3, PAD, PAD), lambda i: (0, 0, 0)),       # other weights: resident
            pl.BlockSpec((8, PAD), lambda i: (0, 0)),               # biases: resident
        ],
        out_specs=pl.BlockSpec((tb, PAD), lambda i: (i, 0)),        # lane-dense packed slab
        compiler_params=pltpu.CompilerParams(
            dimension_semantics=("parallel",),                      # shard batch over TCs
        ),
    )(x, w_enc_p, w_stack, b_stack)

    c = packed[:, :NUM_CONCEPTS]
    logits = packed[:, LOGIT_LO:LOGIT_HI]
    probs = packed[:, PROB_LO:PROB_HI]
    return c, probs, logits


# ---------------------------------------------------------------------------
# Synthetic params + pure-JAX reference
# ---------------------------------------------------------------------------
def init_params(key):
    """Deterministic synthetic parameters, stored as (in, out) + (1, out)."""
    ks = jax.random.split(key, 8)

    def linear(kw, kb, fan_in, fan_out):
        bound = 1.0 / jnp.sqrt(fan_in)
        w = jax.random.uniform(kw, (fan_in, fan_out), jnp.float32, -bound, bound)
        b = jax.random.uniform(kb, (1, fan_out), jnp.float32, -bound, bound)
        return w, b

    w_enc, b_enc = linear(ks[0], ks[1], NUM_COVARIATES, NUM_HIDDEN_Z)
    w_probe, b_probe = linear(ks[2], ks[3], NUM_HIDDEN_Z, NUM_CONCEPTS)
    w1, b1 = linear(ks[4], ks[5], NUM_CONCEPTS, NUM_HIDDEN_Y)
    w2, b2 = linear(ks[6], ks[7], NUM_HIDDEN_Y, NUM_CLASSES)
    return (w_enc, b_enc, w_probe, b_probe, w1, b1, w2, b2)


def pcbm_reference(x, params):
    (w_enc, b_enc, w_probe, b_probe, w1, b1, w2, b2) = params
    z = jnp.maximum(x @ w_enc + b_enc, 0.0)
    c = jax.nn.sigmoid(z @ w_probe + b_probe)
    h = jnp.maximum(c @ w1 + b1, 0.0)
    logits = h @ w2 + b2
    probs = jax.nn.softmax(logits, axis=1)
    return c, probs, logits


if __name__ == "__main__":
    key = jax.random.PRNGKey(0)
    kx, kp = jax.random.split(key)
    params = init_params(kp)

    # One-time packing, reused for every forward call.
    packed_params = prepare_params(params)
    jax.block_until_ready(packed_params)

    # Check the tiny single-tile case and a larger ragged-batch case.
    for B in (BATCH, 300):
        x = jax.random.normal(jax.random.fold_in(kx, B), (B, NUM_COVARIATES), jnp.float32)

        c, probs, logits = pcbm_forward(x, packed_params)
        jax.block_until_ready((c, probs, logits))

        c_r, probs_r, logits_r = pcbm_reference(x, params)
        assert jnp.allclose(c, c_r, atol=1e-4), f"concept mismatch (B={B})"
        assert jnp.allclose(logits, logits_r, atol=1e-4), f"logits mismatch (B={B})"
        assert jnp.allclose(probs, probs_r, atol=1e-4), f"probs mismatch (B={B})"

    print("KERNEL_OK")
</pallas_src>

<mosaic_0001>
module attributes {stable_mosaic.version = 11 : i64} {
  func.func @pcbm_kernel(%arg0: i32, %arg1: memref<8x32xf32, #tpu.memory_space<vmem>>, %arg2: memref<32x128xf32, #tpu.memory_space<vmem>>, %arg3: memref<3x128x128xf32, #tpu.memory_space<vmem>>, %arg4: memref<8x128xf32, #tpu.memory_space<vmem>>, %arg5: memref<8x128xf32, #tpu.memory_space<vmem>>) attributes {dimension_semantics = [#tpu.dimension_semantics<parallel>], iteration_bounds = array<i64: 1>, scalar_prefetch = 0 : i64, scratch_operands = 0 : i64, tpu.core_type = #tpu.core_type<tc>, window_params = [{transform_indices = @transform_0, window_bounds = array<i64: 8, 32>}, {pipeline_mode = #tpu.pipeline_mode<synchronous>, transform_indices = @transform_1, window_bounds = array<i64: 32, 128>}, {pipeline_mode = #tpu.pipeline_mode<synchronous>, transform_indices = @transform_2, window_bounds = array<i64: 3, 128, 128>}, {pipeline_mode = #tpu.pipeline_mode<synchronous>, transform_indices = @transform_3, window_bounds = array<i64: 8, 128>}, {transform_indices = @transform_4, window_bounds = array<i64: 8, 128>}]} {
    %c0 = arith.constant 0 : index
    %c0_0 = arith.constant 0 : index
    %0 = vector.load %arg1[%c0, %c0_0] : memref<8x32xf32, #tpu.memory_space<vmem>>, vector<8x32xf32>
    %c0_1 = arith.constant 0 : index
    %c0_2 = arith.constant 0 : index
    %1 = vector.load %arg4[%c0_1, %c0_2] : memref<8x128xf32, #tpu.memory_space<vmem>>, vector<8x128xf32>
    %2 = vector.extract_strided_slice %1 {offsets = [0, 0], sizes = [1, 128], strides = [1, 1]} : vector<8x128xf32> to vector<1x128xf32>
    %3 = vector.extract_strided_slice %1 {offsets = [1, 0], sizes = [1, 128], strides = [1, 1]} : vector<8x128xf32> to vector<1x128xf32>
    %4 = vector.extract_strided_slice %1 {offsets = [2, 0], sizes = [1, 128], strides = [1, 1]} : vector<8x128xf32> to vector<1x128xf32>
    %5 = vector.extract_strided_slice %1 {offsets = [3, 0], sizes = [1, 128], strides = [1, 1]} : vector<8x128xf32> to vector<1x128xf32>
    %c0_3 = arith.constant 0 : index
    %c0_4 = arith.constant 0 : index
    %6 = vector.load %arg2[%c0_3, %c0_4] : memref<32x128xf32, #tpu.memory_space<vmem>>, vector<32x128xf32>
    %cst = arith.constant dense<0.000000e+00> : vector<8x128xf32>
    %7 = tpu.matmul %0, %6, %cst {dimension_numbers = #tpu.dot_dimension_numbers<[1], [0], [0], [1], [0, 0, 1, 1], [], []>} : vector<8x32xf32>, vector<32x128xf32>, vector<8x128xf32> -> vector<8x128xf32>
    %8 = vector.broadcast %2 : vector<1x128xf32> to vector<8x128xf32>
    %9 = arith.addf %7, %8 : vector<8x128xf32>
    %cst_5 = arith.constant 0.000000e+00 : f32
    %10 = vector.broadcast %cst_5 : f32 to vector<8x128xf32>
    %11 = arith.maximumf %9, %10 : vector<8x128xf32>
    %c0_6 = arith.constant 0 : index
    %c0_7 = arith.constant 0 : index
    %c0_8 = arith.constant 0 : index
    %12 = vector.load %arg3[%c0_6, %c0_7, %c0_8] : memref<3x128x128xf32, #tpu.memory_space<vmem>>, vector<1x128x128xf32>
    %13 = vector.shape_cast %12 : vector<1x128x128xf32> to vector<128x128xf32>
    %cst_9 = arith.constant dense<0.000000e+00> : vector<8x128xf32>
    %14 = tpu.matmul %11, %13, %cst_9 {dimension_numbers = #tpu.dot_dimension_numbers<[1], [0], [0], [1], [0, 0, 1, 1], [], []>} : vector<8x128xf32>, vector<128x128xf32>, vector<8x128xf32> -> vector<8x128xf32>
    %15 = vector.broadcast %3 : vector<1x128xf32> to vector<8x128xf32>
    %16 = arith.addf %14, %15 : vector<8x128xf32>
    %17 = arith.negf %16 : vector<8x128xf32>
    %18 = math.exp %17 : vector<8x128xf32>
    %cst_10 = arith.constant 1.000000e+00 : f32
    %19 = vector.broadcast %cst_10 : f32 to vector<8x128xf32>
    %20 = arith.addf %19, %18 : vector<8x128xf32>
    %21 = arith.divf %19, %20 : vector<8x128xf32>
    %c1 = arith.constant 1 : index
    %c0_11 = arith.constant 0 : index
    %c0_12 = arith.constant 0 : index
    %22 = vector.load %arg3[%c1, %c0_11, %c0_12] : memref<3x128x128xf32, #tpu.memory_space<vmem>>, vector<1x128x128xf32>
    %23 = vector.shape_cast %22 : vector<1x128x128xf32> to vector<128x128xf32>
    %cst_13 = arith.constant dense<0.000000e+00> : vector<8x128xf32>
    %24 = tpu.matmul %21, %23, %cst_13 {dimension_numbers = #tpu.dot_dimension_numbers<[1], [0], [0], [1], [0, 0, 1, 1], [], []>} : vector<8x128xf32>, vector<128x128xf32>, vector<8x128xf32> -> vector<8x128xf32>
    %25 = vector.broadcast %4 : vector<1x128xf32> to vector<8x128xf32>
    %26 = arith.addf %24, %25 : vector<8x128xf32>
    %cst_14 = arith.constant 0.000000e+00 : f32
    %27 = vector.broadcast %cst_14 : f32 to vector<8x128xf32>
    %28 = arith.maximumf %26, %27 : vector<8x128xf32>
    %c2 = arith.constant 2 : index
    %c0_15 = arith.constant 0 : index
    %c0_16 = arith.constant 0 : index
    %29 = vector.load %arg3[%c2, %c0_15, %c0_16] : memref<3x128x128xf32, #tpu.memory_space<vmem>>, vector<1x128x128xf32>
    %30 = vector.shape_cast %29 : vector<1x128x128xf32> to vector<128x128xf32>
    %cst_17 = arith.constant dense<0.000000e+00> : vector<8x128xf32>
    %31 = tpu.matmul %28, %30, %cst_17 {dimension_numbers = #tpu.dot_dimension_numbers<[1], [0], [0], [1], [0, 0, 1, 1], [], []>} : vector<8x128xf32>, vector<128x128xf32>, vector<8x128xf32> -> vector<8x128xf32>
    %32 = vector.broadcast %5 : vector<1x128xf32> to vector<8x128xf32>
    %33 = arith.addf %31, %32 : vector<8x128xf32>
    %34 = tpu.iota {dimensions = array<i32: 1>} : vector<1x128xi32>
    %c20_i32 = arith.constant 20 : i32
    %35 = vector.broadcast %c20_i32 : i32 to vector<1x128xi32>
    %36 = arith.cmpi sge, %34, %35 : vector<1x128xi32>
    %c24_i32 = arith.constant 24 : i32
    %37 = vector.broadcast %c24_i32 : i32 to vector<1x128xi32>
    %38 = arith.cmpi slt, %34, %37 : vector<1x128xi32>
    %39 = arith.andi %36, %38 : vector<1x128xi1>
    %cst_18 = arith.constant -1.000000e+30 : f32
    %40 = vector.shape_cast %39 : vector<1x128xi1> to vector<1x128xi1>
    %41 = vector.broadcast %40 : vector<1x128xi1> to vector<8x128xi1>
    %42 = vector.broadcast %cst_18 : f32 to vector<8x128xf32>
    %43 = arith.select %41, %33, %42 : vector<8x128xi1>, vector<8x128xf32>
    %cst_19 = arith.constant dense<0xFF800000> : vector<8xf32>
    %44 = vector.multi_reduction <maximumf>, %43, %cst_19 [1] : vector<8x128xf32> to vector<8xf32>
    %45 = vector.shape_cast %44 : vector<8xf32> to vector<8x1xf32>
    %46 = vector.broadcast %45 : vector<8x1xf32> to vector<8x128xf32>
    %47 = arith.subf %43, %46 : vector<8x128xf32>
    %48 = math.exp %47 : vector<8x128xf32>
    %cst_20 = arith.constant dense<0.000000e+00> : vector<8xf32>
    %49 = vector.multi_reduction <add>, %48, %cst_20 [1] : vector<8x128xf32> to vector<8xf32>
    %50 = vector.shape_cast %49 : vector<8xf32> to vector<8x1xf32>
    %51 = tpu.reciprocal %50 : vector<8x1xf32> -> vector<8x1xf32>
    %52 = vector.broadcast %51 : vector<8x1xf32> to vector<8x128xf32>
    %53 = arith.mulf %48, %52 : vector<8x128xf32>
    %54 = vector.shape_cast %39 : vector<1x128xi1> to vector<1x128xi1>
    %55 = vector.broadcast %54 : vector<1x128xi1> to vector<8x128xi1>
    %56 = arith.select %55, %53, %33 : vector<8x128xi1>, vector<8x128xf32>
    %57 = arith.addf %21, %56 : vector<8x128xf32>
    %c0_21 = arith.constant 0 : index
    %c0_22 = arith.constant 0 : index
    %58 = vector.load %arg5[%c0_21, %c0_22] : memref<8x128xf32, #tpu.memory_space<vmem>>, vector<8x128xf32>
    tpu.vector_store %arg5[%c0_21, %c0_22], %57 {strides = array<i32>} : memref<8x128xf32, #tpu.memory_space<vmem>>, vector<8x128xf32>,
    return
  }
  func.func @transform_0(%arg0: i32) -> (i32, i32) {
    %c0_i32 = arith.constant 0 : i32
    %c0_i32_0 = arith.constant 0 : i32
    return %arg0, %c0_i32 : i32, i32
  }
  func.func @transform_1(%arg0: i32) -> (i32, i32) {
    %c0_i32 = arith.constant 0 : i32
    %c0_i32_0 = arith.constant 0 : i32
    %c0_i32_1 = arith.constant 0 : i32
    return %c0_i32, %c0_i32_0 : i32, i32
  }
  func.func @transform_2(%arg0: i32) -> (i32, i32, i32) {
    %c0_i32 = arith.constant 0 : i32
    %c0_i32_0 = arith.constant 0 : i32
    %c0_i32_1 = arith.constant 0 : i32
    %c0_i32_2 = arith.constant 0 : i32
    return %c0_i32, %c0_i32_0, %c0_i32_1 : i32, i32, i32
  }
  func.func @transform_3(%arg0: i32) -> (i32, i32) {
    %c0_i32 = arith.constant 0 : i32
    %c0_i32_0 = arith.constant 0 : i32
    %c0_i32_1 = arith.constant 0 : i32
    return %c0_i32, %c0_i32_0 : i32, i32
  }
  func.func @transform_4(%arg0: i32) -> (i32, i32) {
    %c0_i32 = arith.constant 0 : i32
    %c0_i32_0 = arith.constant 0 : i32
    return %arg0, %c0_i32 : i32, i32
  }
}

</mosaic_0001>

<bundles_post_ra>
// kernel: tpu_custom_call.1
= control target key start
LH: loop header
LB: loop body
LE: loop exit
PB: predicated region body
PF: predicated region fallthrough
CT: control target
= control target key end

     0   :  { %9 = vsyncpa [#allocation3], 0  ;;  %s900_s0 = inlined_call_operand.hbm [shape: f32[8,32], index: 0, kind: input, shape index: {}]   ;;  %s901_s1 = inlined_call_operand.hbm [shape: f32[32,128], index: 1, kind: input, shape index: {}]   ;;  %s902_s2 = inlined_call_operand.hbm [shape: f32[3,128,128], index: 2, kind: input, shape index: {}]   ;;  %s903_s3 = inlined_call_operand.hbm [shape: f32[8,128], index: 3, kind: input, shape index: {}]   ;;  %s904_s4 = inlined_call_operand.hbm [shape: f32[8,128], index: 4, kind: output, shape index: {}]  }
   0x1   :  { %10 = vsyncpa [#allocation6], 0 }
   0x2   :  { %11 = vsyncpa [#allocation9], 0 }
   0x3   :  { %12 = vsyncpa [#allocation4], 0  ;;  %s769_s15 = smov [#allocation5]  }
   0x4   :  { %s28_s16 = sshll.u32 %s769_s15, 4  ;;  %s29_s16 = int_to_ptr.vmem [resolvable:$true] %s28_s16 }
   0x5   :  { %s669_s17 = scalar_lea.vmem %s29_s16, 512  ;;  %p674_p1 = scmp.lt.s32.totalorder %s29_s16, %s29_s16 }
   0x6   :  { %p670_p0 = scmp.ne.s32.totalorder %s29_s16, %s669_s17  ;;  %p675_p2 = scmp.lt.s32.totalorder %s669_s17, %s669_s17 }
   0x8   :  { %p676_p3 = por %p675_p2, %p674_p1 }
   0xa   :  { %p677_p4 = pnand %p676_p3, %p670_p0 }
   0xc   :  { %680 = shalt.err (!%p677_p4)
}
   0xd   :  { %s770_s18 = smov 128   ;;  %s771_s19 = smov 8  }
   0xe   :  { %34 = dma.hbm_to_vmem [thread:$0]  %s901_s1, 512, %s29_s16, [#allocation6], %s770_s18, %s770_s18, %s771_s19  }
   0xf   :  { %s772_s22 = smov [#allocation2]   ;;  %s773_s24 = smov [#allocation7]  }
  0x10   :  { %s19_s23 = sshll.u32 %s772_s22, 4  ;;  %s40_s25 = sshll.u32 %s773_s24, 4  ;;  %s20_s23 = int_to_ptr.vmem [resolvable:$true] %s19_s23  ;;  %s41_s25 = int_to_ptr.vmem [resolvable:$true] %s40_s25 }
  0x11   :  { %s689_s26 = scalar_lea.vmem %s20_s23, 128  ;;  %p694_p6 = scmp.lt.s32.totalorder %s20_s23, %s20_s23 }
  0x12   :  { %p690_p5 = scmp.ne.s32.totalorder %s20_s23, %s689_s26  ;;  %p695_p7 = scmp.lt.s32.totalorder %s689_s26, %s689_s26 }
  0x14   :  { %p696_p8 = por %p695_p7, %p694_p6 }
  0x16   :  { %p697_p9 = pnand %p696_p8, %p690_p5 }
  0x18   :  { %700 = shalt.err (!%p697_p9)
}
  0x19   :  { %22 = dma.hbm_to_vmem [thread:$0]  %s900_s0, 128, %s20_s23, [#allocation3]  }
  0x1a   :  { %s709_s29 = scalar_lea.vmem %s41_s25, 6144  ;;  %p714_p11 = scmp.lt.s32.totalorder %s41_s25, %s41_s25 }
  0x1b   :  { %p710_p10 = scmp.ne.s32.totalorder %s41_s25, %s709_s29  ;;  %p715_p12 = scmp.lt.s32.totalorder %s709_s29, %s709_s29 }
  0x1d   :  { %p716_p13 = por %p715_p12, %p714_p11 }
  0x1f   :  { %p717_p0 = pnand %p716_p13, %p710_p10 }
  0x21   :  { %720 = shalt.err (!%p717_p0)
}
  0x22   :  { %46 = dma.hbm_to_vmem [thread:$0]  %s902_s2, 6144, %s41_s25, [#allocation6], %s770_s18, %s770_s18, %s771_s19  }
  0x23   :  { %s774_s5 = smov [#allocation8]  }
  0x24   :  { %s53_s6 = sshll.u32 %s774_s5, 4  ;;  %s54_s6 = int_to_ptr.vmem [resolvable:$true] %s53_s6 }
  0x25   :  { %s729_s7 = scalar_lea.vmem %s54_s6, 128  ;;  %p734_p2 = scmp.lt.s32.totalorder %s54_s6, %s54_s6 }
  0x26   :  { %p730_p1 = scmp.ne.s32.totalorder %s54_s6, %s729_s7  ;;  %p735_p3 = scmp.lt.s32.totalorder %s729_s7, %s729_s7 }
  0x28   :  { %p736_p4 = por %p735_p3, %p734_p2 }
  0x2a   :  { %p737_p5 = pnand %p736_p4, %p730_p1 }
  0x2c   :  { %740 = shalt.err (!%p737_p5)
}
  0x2d   :  { %56 = dma.hbm_to_vmem [thread:$0]  %s903_s3, 128, %s54_s6, [#allocation9]  }
  0x2e   :  { %761 = dma.done.wait [#allocation3], 128  }
  0x2f   :  { %762 = vsyncadd [#allocation3], 4294967168 }
  0x30   :  { %763 = dma.done.wait [#allocation6], 6656  }
  0x31   :  { %764 = vsyncadd [#allocation6], 4294960640 }
  0x32   :  { %765 = dma.done.wait [#allocation9], 128  }
  0x33   :  { %766 = vsyncadd [#allocation9], 4294967168  ;;  %v775_v0 = vmov 0.0   ;;  %vm776_vm0 = vmmov 0   ;;  %v74_v1 = vld [vmem:[#allocation5 + $0x18] sm:$0xff]  ;;  %v73_v2 = vld [vmem:[#allocation5 + $0x10] sm:$0xff]  ;;  %v75_v22 = vlaneseq }
  0x34   :  { %528 = vmatprep.subr.mxu0 %v775_v0  ;;  %536 = vmatprep.mubr.msk.f32.mxu0 %vm776_vm0, %v775_v0  ;;  %v169_v3 = vld [vmem:[#allocation7 + $0x78] sm:$0xff]  ;;  %v72_v4 = vld [vmem:[#allocation5 + $0x8] sm:$0xff]  ;;  %v168_v5 = vld [vmem:[#allocation7 + $0x70] sm:$0xff]  ;;  %vm79_vm1 = vcmask 261120   ;;  %s777_s2 = smov [#allocation10]  }
  0x35   :  { %539 = vmatprep.subr.mxu1 %v775_v0  ;;  %571 = vmatprep.mubr.msk.f32.mxu1 %vm776_vm0, %v775_v0  ;;  %v167_v6 = vld [vmem:[#allocation7 + $0x68] sm:$0xff]  ;;  %v71_v7 = vld [vmem:[#allocation5] sm:$0xff]  ;;  %v69_v8 = vld [vmem:[#allocation2] sm:$0xff]  ;;  %v844_v23 = vshrl.u32 %v75_v22, 7  ;;  %s459_s3 = sshll.u32 %s777_s2, 4  ;;  %s460_s3 = int_to_ptr.vmem [resolvable:$true] %s459_s3 }
  0x36   :  { %529 = vmatpush3.msra.mxu0 %v74_v1  ;;  %540 = vmatpush3.msra.mxu1 %v169_v3  ;;  %v166_v9 = vld [vmem:[#allocation7 + $0x60] sm:$0xff]  ;;  %v165_v10 = vld [vmem:[#allocation7 + $0x58] sm:$0xff]  ;;  %v164_v11 = vld [vmem:[#allocation7 + $0x50] sm:$0xff]  ;;  %s741_s9 = scalar_lea.vmem %s460_s3, 128  ;;  %p746_p7 = scmp.lt.s32.totalorder %s460_s3, %s460_s3 }
  0x37   :  { %530 = vmatprep.subr.mxu0 %v775_v0  ;;  %541 = vmatprep.subr.mxu1 %v775_v0  ;;  %v163_v12 = vld [vmem:[#allocation7 + $0x48] sm:$0xff]  ;;  %v162_v13 = vld [vmem:[#allocation7 + $0x40] sm:$0xff]  ;;  %v161_v14 = vld [vmem:[#allocation7 + $0x38] sm:$0xff]  ;;  %v77_v24 = vsub.s32 0, %v844_v23  ;;  %v172_v60 = vsub.s32 1, %v844_v23  ;;  %p742_p6 = scmp.ne.s32.totalorder %s460_s3, %s741_s9  ;;  %p747_p8 = scmp.lt.s32.totalorder %s741_s9, %s741_s9 }
  0x38   :  { %531 = vmatpush3.msra.mxu0 %v73_v2  ;;  %542 = vmatpush3.msra.mxu1 %v168_v5  ;;  %v160_v15 = vld [vmem:[#allocation7 + $0x30] sm:$0xff]  ;;  %v159_v16 = vld [vmem:[#allocation7 + $0x28] sm:$0xff]  ;;  %v158_v17 = vld [vmem:[#allocation7 + $0x20] sm:$0xff] }
  0x39   :  { %532 = vmatprep.subr.mxu0 %v775_v0  ;;  %543 = vmatprep.subr.mxu1 %v775_v0  ;;  %v157_v18 = vld [vmem:[#allocation7 + $0x18] sm:$0xff]  ;;  %v156_v19 = vld [vmem:[#allocation7 + $0x10] sm:$0xff]  ;;  %v155_v20 = vld [vmem:[#allocation7 + $0x8] sm:$0xff]  ;;  %p748_p9 = por %p747_p8, %p746_p7 }
  0x3a   :  { %533 = vmatpush3.msra.mxu0 %v72_v4  ;;  %544 = vmatpush3.msra.mxu1 %v167_v6  ;;  %v154_v21 = vld [vmem:[#allocation7] sm:$0xff]  ;;  %v266_v31 = vld [vmem:[#allocation7 + $0xf8] sm:$0xff]  ;;  %v265_v32 = vld [vmem:[#allocation7 + $0xf0] sm:$0xff] }
  0x3b   :  { %534 = vmatprep.subr.mxu0 %v775_v0  ;;  %545 = vmatprep.subr.mxu1 %v775_v0  ;;  %v847_v25 = vld [vmem:[#allocation8] sm:$0xff]  ;;  %v264_v33 = vld [vmem:[#allocation7 + $0xe8] sm:$0xff]  ;;  %v262_v35 = vld [vmem:[#allocation7 + $0xd8] sm:$0xff]  ;;  %p749_p10 = pnand %p748_p9, %p742_p6 }
  0x3c   :  { %535 = vmatpush3.msra.mxu0 %v71_v7  ;;  %546 = vmatpush3.msra.mxu1 %v166_v9  ;;  %v78_v26 = vrot.slane %v847_v25, %v77_v24  ;;  %v263_v34 = vld [vmem:[#allocation7 + $0xe0] sm:$0xff]  ;;  %v261_v36 = vld [vmem:[#allocation7 + $0xd0] sm:$0xff]  ;;  %v260_v37 = vld [vmem:[#allocation7 + $0xc8] sm:$0xff]  ;;  %v173_v61 = vrot.slane %v847_v25, %v172_v60  ;;  %v269_v9 = vsub.s32 2, %v844_v23 }
  0x3d   :  { %537 = vmatmul.mubr.msk.f32.vlgmr.msra.gmra.mxu0 %vm79_vm1, %v69_v8  ;;  %547 = vmatprep.subr.mxu1 %v775_v0  ;;  %v259_v38 = vld [vmem:[#allocation7 + $0xc0] sm:$0xff]  ;;  %v258_v39 = vld [vmem:[#allocation7 + $0xb8] sm:$0xff]  ;;  %v257_v40 = vld [vmem:[#allocation7 + $0xb0] sm:$0xff] }
  0x3e   :  { %574 = vmatprep.subr.mxu0 %v775_v0  ;;  %548 = vmatpush3.msra.mxu1 %v165_v10  ;;  %v256_v41 = vld [vmem:[#allocation7 + $0xa8] sm:$0xff]  ;;  %v255_v42 = vld [vmem:[#allocation7 + $0xa0] sm:$0xff]  ;;  %v254_v43 = vld [vmem:[#allocation7 + $0x98] sm:$0xff]  ;;  %v270_v10 = vrot.slane %v847_v25, %v269_v9 }
  0x3f   :  { %606 = vmatprep.mubr.msk.f32.mxu0 %vm776_vm0, %v775_v0  ;;  %549 = vmatprep.subr.mxu1 %v775_v0  ;;  %v253_v44 = vld [vmem:[#allocation7 + $0x90] sm:$0xff]  ;;  %v252_v45 = vld [vmem:[#allocation7 + $0x88] sm:$0xff]  ;;  %v251_v46 = vld [vmem:[#allocation7 + $0x80] sm:$0xff] }
  0x40   :  { %550 = vmatpush3.msra.mxu1 %v164_v11  ;;  %575 = vmatpush3.msra.mxu0 %v266_v31  ;;  %v358_v47 = vld [vmem:[#allocation7 + $0x178] sm:$0xff]  ;;  %v357_v48 = vld [vmem:[#allocation7 + $0x170] sm:$0xff]  ;;  %v356_v49 = vld [vmem:[#allocation7 + $0x168] sm:$0xff] }
  0x41   :  { %551 = vmatprep.subr.mxu1 %v775_v0  ;;  %576 = vmatprep.subr.mxu0 %v775_v0  ;;  %v355_v50 = vld [vmem:[#allocation7 + $0x160] sm:$0xff]  ;;  %v354_v51 = vld [vmem:[#allocation7 + $0x158] sm:$0xff]  ;;  %v353_v52 = vld [vmem:[#allocation7 + $0x150] sm:$0xff] }
  0x42   :  { %552 = vmatpush3.msra.mxu1 %v163_v12  ;;  %577 = vmatpush3.msra.mxu0 %v265_v32  ;;  %v352_v53 = vld [vmem:[#allocation7 + $0x148] sm:$0xff]  ;;  %v351_v54 = vld [vmem:[#allocation7 + $0x140] sm:$0xff]  ;;  %v350_v55 = vld [vmem:[#allocation7 + $0x138] sm:$0xff] }
  0x43   :  { %553 = vmatprep.subr.mxu1 %v775_v0  ;;  %578 = vmatprep.subr.mxu0 %v775_v0  ;;  %v349_v56 = vld [vmem:[#allocation7 + $0x130] sm:$0xff]  ;;  %v348_v57 = vld [vmem:[#allocation7 + $0x128] sm:$0xff]  ;;  %v347_v58 = vld [vmem:[#allocation7 + $0x120] sm:$0xff] }
  0x44   :  { %554 = vmatpush3.msra.mxu1 %v162_v13  ;;  %579 = vmatpush3.msra.mxu0 %v264_v33  ;;  %v346_v59 = vld [vmem:[#allocation7 + $0x118] sm:$0xff]  ;;  %v345_v6 = vld [vmem:[#allocation7 + $0x110] sm:$0xff]  ;;  %v344_v7 = vld [vmem:[#allocation7 + $0x108] sm:$0xff] }
  0x45   :  { %555 = vmatprep.subr.mxu1 %v775_v0  ;;  %580 = vmatprep.subr.mxu0 %v775_v0  ;;  %v343_v8 = vld [vmem:[#allocation7 + $0x100] sm:$0xff] }
  0x46   :  { %556 = vmatpush3.msra.mxu1 %v161_v14  ;;  %581 = vmatpush3.msra.mxu0 %v263_v34 }
  0x47   :  { %557 = vmatprep.subr.mxu1 %v775_v0  ;;  %582 = vmatprep.subr.mxu0 %v775_v0 }
  0x48   :  { %558 = vmatpush3.msra.mxu1 %v160_v15  ;;  %583 = vmatpush3.msra.mxu0 %v262_v35  ;;  %v361_v15 = vsub.s32 3, %v844_v23 }
  0x49   :  { %559 = vmatprep.subr.mxu1 %v775_v0  ;;  %584 = vmatprep.subr.mxu0 %v775_v0 }
  0x4a   :  { %560 = vmatpush3.msra.mxu1 %v159_v16  ;;  %585 = vmatpush3.msra.mxu0 %v261_v36  ;;  %v434_v16 = vand.u32 127, %v75_v22 }
  0x4b   :  { %561 = vmatprep.subr.mxu1 %v775_v0  ;;  %586 = vmatprep.subr.mxu0 %v775_v0 }
  0x4c   :  { %562 = vmatpush3.msra.mxu1 %v158_v17  ;;  %587 = vmatpush3.msra.mxu0 %v260_v37  ;;  %v362_v17 = vrot.slane %v847_v25, %v361_v15  ;;  %vm435_vm2 = vcmp.ge.s32.totalorder %v434_v16, 20  ;;  %vm436_vm3 = vcmp.lt.s32.totalorder %v434_v16, 24 }
  0x4d   :  { %563 = vmatprep.subr.mxu1 %v775_v0  ;;  %588 = vmatprep.subr.mxu0 %v775_v0  ;;  %vm889_vm4 = vmand %vm435_vm2, %vm436_vm3 }
  0x4e   :  { %564 = vmatpush3.msra.mxu1 %v157_v18  ;;  %589 = vmatpush3.msra.mxu0 %v259_v38 }
  0x4f   :  { %565 = vmatprep.subr.mxu1 %v775_v0  ;;  %590 = vmatprep.subr.mxu0 %v775_v0 }
  0x50   :  { %566 = vmatpush3.msra.mxu1 %v156_v19  ;;  %591 = vmatpush3.msra.mxu0 %v258_v39 }
  0x51   :  { %567 = vmatprep.subr.mxu1 %v775_v0  ;;  %592 = vmatprep.subr.mxu0 %v775_v0 }
  0x52   :  { %568 = vmatpush3.msra.mxu1 %v155_v20  ;;  %593 = vmatpush3.msra.mxu0 %v257_v40 }
  0x53   :  { %569 = vmatprep.subr.mxu1 %v775_v0  ;;  %594 = vmatprep.subr.mxu0 %v775_v0 }
  0x54   :  { %570 = vmatpush3.msra.mxu1 %v154_v21  ;;  %595 = vmatpush3.msra.mxu0 %v256_v41 }
  0x55   :  { %609 = vmatprep.subr.mxu1 %v775_v0  ;;  %596 = vmatprep.subr.mxu0 %v775_v0 }
  0x56   :  { %597 = vmatpush3.msra.mxu0 %v255_v42 }
  0x57   :  { %598 = vmatprep.subr.mxu0 %v775_v0 }
  0x58   :  { %599 = vmatpush3.msra.mxu0 %v254_v43 }
  0x59   :  { %600 = vmatprep.subr.mxu0 %v775_v0 }
  0x5a   :  { %601 = vmatpush3.msra.mxu0 %v253_v44 }
  0x5b   :  { %602 = vmatprep.subr.mxu0 %v775_v0 }
  0x5c   :  { %603 = vmatpush3.msra.mxu0 %v252_v45 }
  0x5d   :  { %604 = vmatprep.subr.mxu0 %v775_v0 }
  0x5e   :  { %605 = vmatpush3.msra.mxu0 %v251_v46 }
  0xfd   :  { %v149_v27 = vpop.f32.mrf.mxu0 }
  0xfe   :  { %v150_v28 = vadd.f32 %v149_v27, %v78_v26 }
  0xff   :  { %v538_v29 = vpop.f32.mrf.mxu0 }
 0x100   :  { %v153_v30 = vmax.f32 %v150_v28, 0.0 }
 0x102   :  { %572 = vmatmul.mubr.f32.vlgmr.msra.gmra.mxu1 %v153_v30 }
 0x103   :  { %641 = vmatprep.mubr.msk.f32.mxu1 %vm776_vm0, %v775_v0  ;;  %610 = vmatpush3.msra.mxu1 %v358_v47 }
 0x104   :  { %611 = vmatprep.subr.mxu1 %v775_v0 }
 0x105   :  { %612 = vmatpush3.msra.mxu1 %v357_v48 }
 0x106   :  { %613 = vmatprep.subr.mxu1 %v775_v0 }
 0x107   :  { %614 = vmatpush3.msra.mxu1 %v356_v49 }
 0x108   :  { %615 = vmatprep.subr.mxu1 %v775_v0 }
 0x109   :  { %616 = vmatpush3.msra.mxu1 %v355_v50 }
 0x10a   :  { %617 = vmatprep.subr.mxu1 %v775_v0 }
 0x10b   :  { %618 = vmatpush3.msra.mxu1 %v354_v51 }
 0x10c   :  { %619 = vmatprep.subr.mxu1 %v775_v0 }
 0x10d   :  { %620 = vmatpush3.msra.mxu1 %v353_v52 }
 0x10e   :  { %621 = vmatprep.subr.mxu1 %v775_v0 }
 0x10f   :  { %622 = vmatpush3.msra.mxu1 %v352_v53 }
 0x110   :  { %623 = vmatprep.subr.mxu1 %v775_v0 }
 0x111   :  { %624 = vmatpush3.msra.mxu1 %v351_v54 }
 0x112   :  { %625 = vmatprep.subr.mxu1 %v775_v0 }
 0x113   :  { %626 = vmatpush3.msra.mxu1 %v350_v55 }
 0x114   :  { %627 = vmatprep.subr.mxu1 %v775_v0 }
 0x115   :  { %628 = vmatpush3.msra.mxu1 %v349_v56 }
 0x116   :  { %629 = vmatprep.subr.mxu1 %v775_v0 }
 0x117   :  { %630 = vmatpush3.msra.mxu1 %v348_v57 }
 0x118   :  { %631 = vmatprep.subr.mxu1 %v775_v0 }
 0x119   :  { %632 = vmatpush3.msra.mxu1 %v347_v58 }
 0x11a   :  { %633 = vmatprep.subr.mxu1 %v775_v0 }
 0x11b   :  { %634 = vmatpush3.msra.mxu1 %v346_v59 }
 0x11c   :  { %635 = vmatprep.subr.mxu1 %v775_v0 }
 0x11d   :  { %636 = vmatpush3.msra.mxu1 %v345_v6 }
 0x11e   :  { %637 = vmatprep.subr.mxu1 %v775_v0 }
 0x11f   :  { %638 = vmatpush3.msra.mxu1 %v344_v7 }
 0x120   :  { %639 = vmatprep.subr.mxu1 %v775_v0 }
 0x121   :  { %640 = vmatpush3.msra.mxu1 %v343_v8 }
 0x1c2   :  { %v240_v62 = vpop.f32.mrf.mxu1 }
 0x1c3   :  { %v241_v63 = vadd.f32 %v240_v62, %v173_v61 }
 0x1c4   :  { %v573_v1 = vpop.f32.mrf.mxu1 }
 0x1c5   :  { %v471_v2 = vmul.f32 -1.442695, %v241_v63 }
 0x1c7   :  { %653 = vpow2.f32 %v471_v2 }
 0x1d4   :  { %v654_v3 = vpop.eup %653 }
 0x1d5   :  { %v247_v4 = vadd.f32 1.0, %v654_v3 }
 0x1d7   :  { %655 = vrcp.f32 %v247_v4 }
 0x1e4   :  { %v656_v5 = vpop.eup %655 }
 0x1e5   :  { %607 = vmatmul.mubr.f32.vlgmr.msra.gmra.mxu0 %v656_v5 }
 0x2a5   :  { %v337_v11 = vpop.f32.mrf.mxu0 }
 0x2a6   :  { %v338_v12 = vadd.f32 %v337_v11, %v270_v10 }
 0x2a7   :  { %v608_v13 = vpop.f32.mrf.mxu0 }
 0x2a8   :  { %v341_v14 = vmax.f32 %v338_v12, 0.0 }
 0x2aa   :  { %642 = vmatmul.mubr.f32.vlgmr.msra.gmra.mxu1 %v341_v14 }
 0x36a   :  { %v429_v0 = vpop.f32.mrf.mxu1 }
 0x36b   :  { %v430_v19 = vadd.f32 %v429_v0, %v362_v17 }
 0x36c   :  { %v643_v20 = vpop.f32.mrf.mxu1 }
 0x36d   :  { %v440_v21 = vsel %vm889_vm4, %v430_v19, -1e+30 }
 0x36e   :  { %441 = vmax.xlane.f32.xlu0 %v440_v21 }
 0x3f7   :  { %v442_v24 = vpop.xlane.xlu0 %441 }
 0x3f8   :  { %v443_v26 = vsub.f32 %v440_v21, %v442_v24 }
 0x3fa   :  { %v444_v23 = vmul.f32 1.442695, %v443_v26 }
 0x3fc   :  { %657 = vpow2.f32 %v444_v23 }
 0x409   :  { %v658_v22 = vpop.eup %657 }
 0x40a   :  { %446 = vadd.xlane.f32.xlu0 %v658_v22 }
 0x493   :  { %v447_v25 = vpop.xlane.xlu0 %446 }
 0x494   :  { %659 = vrcp.f32 %v447_v25 }
 0x4a1   :  { %v660_v27 = vpop.eup %659 }
 0x4a2   :  { %v449_v28 = vmul.f32 %v660_v27, %v658_v22 }
 0x4a4   :  { %v450_v29 = vsel %vm889_vm4, %v449_v28, %v430_v19 }
 0x4a5   :  { %v451_v30 = vadd.f32 %v656_v5, %v450_v29 }
 0x4a7   :  { %452 = vst [vmem:[#allocation10] sm:$0xff] %v451_v30 }
 0x4a8   :  { %752 = shalt.err (!%p749_p10)
}
 0x4a9   :  { %462 = dma.vmem_to_hbm [thread:$0]  %s460_s3, 128, %s904_s4, [#allocation4]  }
 0x4aa   :  { %767 = dma.done.wait [#allocation4], 128  }
 0x4ab   :  { %768 = vsyncadd [#allocation4], 4294967168 }
 0x4ac   :  { %466 = vsyncpa [#allocation3], 1 }
 0x4ad   :  { %467 = vsyncpa [#allocation6], 1 }
 0x4ae   :  { %468 = vsyncpa [#allocation9], 1 }
 0x4af   :  { %469 = vsyncpa [#allocation4], 1 }

</bundles_post_ra>
